<compile_context>
chip_gen: v6e
topology: v6e:2x2x1
jax: 0.10.0
libtpu: 0.0.40
codegen_flags: <defaults>
</compile_context>

<pallas_src>
import jax
import jax.numpy as jnp
from jax.experimental import pallas as pl
from jax.experimental.pallas import tpu as pltpu

LANE = 128  # TPU lane width: feature dims are padded to a multiple of this.

_VMEM = pl.BlockSpec(memory_space=pltpu.MemorySpace.VMEM)


def _round_up(x, m):
    return ((x + m - 1) // m) * m


def _pad2(x, rows, cols):
    return jnp.pad(x, ((0, rows - x.shape[0]), (0, cols - x.shape[1])))


# ------------------------------------------------------------------ kernel --
def _make_fused_gin_kernel(num_gin_layers, head_offsets, head_widths):
    """Builds the fully fused forward kernel for a fixed layer count.

    head_offsets / head_widths: static lane offsets/widths (multiples of 128)
    of each layer's pooled row inside the concatenated pooled-feature scratch.
    """

    def kernel(*refs):
        adjs_ref = refs[0]                 # VMEM (L, N, N) bf16, eps on diag
        h0_ref = refs[1]                   # VMEM (N, Dp) f32
        idx = 2
        gin = []
        for _ in range(num_gin_layers):
            gin.append(refs[idx:idx + 6])  # w1f, b1f, w2f, b2f, s_out, t_out
            idx += 6
        wcat_ref = refs[idx]; idx += 1     # VMEM (dtot, Op) f32 stacked heads
        bsum_ref = refs[idx]; idx += 1     # VMEM (1, Op) f32 summed head bias
        o_ref = refs[idx]; idx += 1        # VMEM (1, Op) f32
        pool_ref = refs[idx]               # VMEM scratch (1, dtot) f32

        h = h0_ref[...]                    # f32 (N, Dp)

        def stash_pooled(i, h_val):
            # SumPooling over nodes, written at a static lane-aligned offset
            # of the concatenated pooled-feature scratch (consumed by the
            # single fused prediction-head matmul at the end).
            off, w = head_offsets[i], head_widths[i]
            pool_ref[:, off:off + w] = jnp.sum(h_val, axis=0, keepdims=True)

        # hidden_rep[0]: the raw input features
        stash_pooled(0, h)

        for l in range(num_gin_layers):
            w1_ref, b1_ref, w2_ref, b2_ref, s_out_ref, t_out_ref = gin[l]

            # GINConv sum aggregation with (1 + eps) folded into the
            # adjacency diagonal: pre = (A + (1+eps) I) @ h  -- one matmul.
            pre = jnp.dot(adjs_ref[l], h.astype(jnp.bfloat16),
                          preferred_element_type=jnp.float32)

            # MLP hidden linear (BN_mlp folded into w1/b1) + ReLU
            z = jnp.dot(pre.astype(jnp.bfloat16), w1_ref[...],
                        preferred_element_type=jnp.float32) + b1_ref[...]
            z = jnp.maximum(z, 0.0)

            # MLP output linear (ApplyNodeFunc BN folded into w2/b2) + ReLU
            z = jnp.dot(z.astype(jnp.bfloat16), w2_ref[...],
                        preferred_element_type=jnp.float32) + b2_ref[...]
            z = jnp.maximum(z, 0.0)

            # outer GIN BatchNorm (eval-mode scale/shift) + ReLU
            h = jnp.maximum(z * s_out_ref[...] + t_out_ref[...], 0.0)

            stash_pooled(l + 1, h)

        # All prediction heads as ONE matmul:
        #   sum_i pooled_i @ Wp_i + bp_i == pooled_cat @ Wp_cat + sum_i bp_i
        o_ref[...] = (jnp.dot(pool_ref[...], wcat_ref[...],
                              preferred_element_type=jnp.float32)
                      + bsum_ref[...])

    return kernel


# ----------------------------------------------------------------- wrapper --
def gin_forward_fused(fused, h0_pad, output_dim):
    """Single-pallas_call GIN forward; returns the (1, output_dim) scores."""
    num_gin_layers = len(fused["gin"])
    n = h0_pad.shape[0]
    dp = h0_pad.shape[1]
    hp = fused["gin"][0][0].shape[1]
    dtot, op = fused["wcat"].shape

    head_widths = [dp] + [hp] * num_gin_layers
    head_offsets = []
    off = 0
    for w in head_widths:
        head_offsets.append(off)
        off += w
    assert off == dtot

    args = [fused["adjs"], h0_pad]
    for layer in fused["gin"]:
        args.extend(layer)
    args.append(fused["wcat"])
    args.append(fused["bsum"])

    # advisory cost estimate for XLA's scheduler
    flops = 0
    for (w1, _, w2, _, _, _) in fused["gin"]:
        flops += 2 * n * n * w1.shape[0]              # (A + (1+eps)I) @ h
        flops += 2 * n * w1.shape[0] * w1.shape[1]    # pre @ W1
        flops += 2 * n * w2.shape[0] * w2.shape[1]    # z @ W2
    flops += 2 * dtot * op                            # fused heads
    bytes_accessed = sum(int(a.size) * a.dtype.itemsize for a in args) + op * 4

    kernel = _make_fused_gin_kernel(num_gin_layers, tuple(head_offsets),
                                    tuple(head_widths))
    out = pl.pallas_call(
        kernel,
        out_shape=jax.ShapeDtypeStruct((1, op), jnp.float32),
        in_specs=[_VMEM] * len(args),
        out_specs=_VMEM,
        scratch_shapes=[pltpu.VMEM((1, dtot), jnp.float32)],
        cost_estimate=pl.CostEstimate(flops=int(flops), transcendentals=0,
                                      bytes_accessed=int(bytes_accessed)),
    )(*args)
    return out[:, :output_dim]


# ------------------------------------------------------------------- params --
def _linear_params(key, in_dim, out_dim):
    """PyTorch nn.Linear default init: U(-1/sqrt(in), 1/sqrt(in))."""
    k_w, k_b = jax.random.split(key)
    bound = 1.0 / (in_dim ** 0.5)
    w = jax.random.uniform(k_w, (in_dim, out_dim), jnp.float32, -bound, bound)
    b = jax.random.uniform(k_b, (1, out_dim), jnp.float32, -bound, bound)
    return w, b


def _bn_scale_shift(key, dim, bn_eps=1e-5):
    """Eval-mode BatchNorm1d folded into scale/shift (deterministic stats)."""
    k1, k2, k3 = jax.random.split(key, 3)
    gamma = 1.0 + 0.1 * jax.random.normal(k1, (1, dim), jnp.float32)
    beta = 0.1 * jax.random.normal(k2, (1, dim), jnp.float32)
    mean = 0.05 * jax.random.normal(k3, (1, dim), jnp.float32)
    var = jnp.ones((1, dim), jnp.float32)
    scale = gamma / jnp.sqrt(var + bn_eps)
    shift = beta - mean * scale
    return scale, shift


def build_gin_params(key, num_layers, input_dim, hidden_dim, output_dim):
    """Logical (unfolded, unpadded) parameters, mirroring the PyTorch module."""
    params = {"gin": [], "pred": []}
    keys = jax.random.split(key, 4 * (num_layers - 1) + num_layers)
    ki = 0
    for layer in range(num_layers - 1):
        in_dim = input_dim if layer == 0 else hidden_dim
        w1, b1 = _linear_params(keys[ki], in_dim, hidden_dim); ki += 1
        w2, b2 = _linear_params(keys[ki], hidden_dim, hidden_dim); ki += 1
        bn_mlp = _bn_scale_shift(keys[ki], hidden_dim); ki += 1
        k_app, k_out = jax.random.split(keys[ki]); ki += 1
        bn_app = _bn_scale_shift(k_app, hidden_dim)
        bn_out = _bn_scale_shift(k_out, hidden_dim)
        eps = jnp.zeros((), jnp.float32)       # GINConv init_eps = 0
        params["gin"].append(dict(eps=eps, w1=w1, b1=b1, bn_mlp=bn_mlp,
                                  w2=w2, b2=b2, bn_app=bn_app, bn_out=bn_out))
    for layer in range(num_layers):
        in_dim = input_dim if layer == 0 else hidden_dim
        wp, bp = _linear_params(keys[ki], in_dim, output_dim); ki += 1
        params["pred"].append((wp, bp))
    return params


def fold_and_pad_params(params, adj, input_dim, hidden_dim, output_dim):
    """Fold eval-mode inner BNs into the linears, fold (1+eps) into the
    adjacency diagonal, stack all prediction heads into one weight matrix,
    zero-pad all feature dims to 128 lanes, and cast MXU operands to bf16."""
    dp = _round_up(input_dim, LANE)
    hp = _round_up(hidden_dim, LANE)
    op = _round_up(output_dim, LANE)

    # per-layer adjacency with the GINConv self term baked into the diagonal
    eye = jnp.eye(adj.shape[0], dtype=jnp.float32)
    adjs = jnp.stack([(adj + (1.0 + p["eps"]) * eye).astype(jnp.bfloat16)
                      for p in params["gin"]])

    gin = []
    for p in params["gin"]:
        s_mlp, t_mlp = p["bn_mlp"]
        s_app, t_app = p["bn_app"]
        s_out, t_out = p["bn_out"]
        w1f = p["w1"] * s_mlp
        b1f = p["b1"] * s_mlp + t_mlp
        w2f = p["w2"] * s_app
        b2f = p["b2"] * s_app + t_app
        in_p = dp if p["w1"].shape[0] == input_dim else hp
        gin.append((
            _pad2(w1f, in_p, hp).astype(jnp.bfloat16),
            _pad2(b1f, 1, hp),
            _pad2(w2f, hp, hp).astype(jnp.bfloat16),
            _pad2(b2f, 1, hp),
            _pad2(s_out, 1, hp),
            _pad2(t_out, 1, hp),
        ))

    # all prediction heads vertically stacked (one fused matmul in-kernel)
    wcat = jnp.concatenate(
        [_pad2(wp, dp if wp.shape[0] == input_dim else hp, op)
         for (wp, _) in params["pred"]], axis=0)
    bsum = jnp.sum(jnp.stack([_pad2(bp, 1, op) for (_, bp) in params["pred"]]),
                   axis=0)

    return {"adjs": adjs, "gin": gin, "wcat": wcat, "bsum": bsum}


# --------------------------------------------------------------- reference --
def gin_reference(adj, h, params):
    """Pure-JAX f32 reference of the original module (eval mode)."""
    hidden_rep = [h]
    for p in params["gin"]:
        s_mlp, t_mlp = p["bn_mlp"]
        s_app, t_app = p["bn_app"]
        s_out, t_out = p["bn_out"]
        pre = (1.0 + p["eps"]) * h + adj @ h
        z = jnp.maximum((pre @ p["w1"] + p["b1"]) * s_mlp + t_mlp, 0.0)
        z = z @ p["w2"] + p["b2"]
        z = jnp.maximum(z * s_app + t_app, 0.0)
        h = jnp.maximum(z * s_out + t_out, 0.0)
        hidden_rep.append(h)
    score = jnp.zeros((1, params["pred"][0][0].shape[1]), jnp.float32)
    for h_i, (wp, bp) in zip(hidden_rep, params["pred"]):
        score = score + (jnp.sum(h_i, axis=0, keepdims=True) @ wp + bp)
    return score


# --------------------------------------------------------------------- main --
if __name__ == "__main__":
    num_layers = 3        # -> 2 GINConv layers + 3 prediction heads
    num_mlp_layers = 2    # 2-layer MLP inside each GINConv
    N = 64                # nodes in the (single) graph
    input_dim = 16
    hidden_dim = 32
    output_dim = 8

    key = jax.random.PRNGKey(0)
    k_adj, k_feat, k_params = jax.random.split(key, 3)

    # deterministic undirected graph (no self loops) as dense adjacency
    upper = (jax.random.uniform(k_adj, (N, N)) < 0.1).astype(jnp.float32)
    adj = jnp.triu(upper, k=1)
    adj = adj + adj.T

    h0 = jax.random.normal(k_feat, (N, input_dim), jnp.float32)

    params = build_gin_params(k_params, num_layers, input_dim, hidden_dim,
                              output_dim)
    fused = fold_and_pad_params(params, adj, input_dim, hidden_dim, output_dim)

    dp = _round_up(input_dim, LANE)
    h0_pad = _pad2(h0, N, dp)                # lane-dense node features

    score = gin_forward_fused(fused, h0_pad, output_dim)
    jax.block_until_ready(score)
    assert score.shape == (1, output_dim)
    assert bool(jnp.all(jnp.isfinite(score)))

    # loose sanity check vs. the f32 reference (kernel matmuls run in bf16)
    ref = gin_reference(adj, h0, params)
    max_err = float(jnp.max(jnp.abs(score - ref)))
    tol = 0.1 * float(jnp.max(jnp.abs(ref))) + 0.05
    assert max_err <= tol, f"max abs err {max_err} > tol {tol}"

    print("KERNEL_OK")
</pallas_src>

<mosaic_0001>
module attributes {stable_mosaic.version = 11 : i64} {
  func.func @kernel(%arg0: memref<2x64x64xbf16, #tpu.memory_space<vmem>>, %arg1: memref<64x128xf32, #tpu.memory_space<vmem>>, %arg2: memref<128x128xbf16, #tpu.memory_space<vmem>>, %arg3: memref<1x128xf32, #tpu.memory_space<vmem>>, %arg4: memref<128x128xbf16, #tpu.memory_space<vmem>>, %arg5: memref<1x128xf32, #tpu.memory_space<vmem>>, %arg6: memref<1x128xf32, #tpu.memory_space<vmem>>, %arg7: memref<1x128xf32, #tpu.memory_space<vmem>>, %arg8: memref<128x128xbf16, #tpu.memory_space<vmem>>, %arg9: memref<1x128xf32, #tpu.memory_space<vmem>>, %arg10: memref<128x128xbf16, #tpu.memory_space<vmem>>, %arg11: memref<1x128xf32, #tpu.memory_space<vmem>>, %arg12: memref<1x128xf32, #tpu.memory_space<vmem>>, %arg13: memref<1x128xf32, #tpu.memory_space<vmem>>, %arg14: memref<384x128xf32, #tpu.memory_space<vmem>>, %arg15: memref<1x128xf32, #tpu.memory_space<vmem>>, %arg16: memref<1x128xf32, #tpu.memory_space<vmem>>, %arg17: memref<1x384xf32, #tpu.memory_space<vmem>>) attributes {dimension_semantics = [], scalar_prefetch = 0 : i64, scratch_operands = 1 : i64, tpu.core_type = #tpu.core_type<tc>} {
    %c0 = arith.constant 0 : index
    %c0_0 = arith.constant 0 : index
    %0 = vector.load %arg1[%c0, %c0_0] : memref<64x128xf32, #tpu.memory_space<vmem>>, vector<64x128xf32>
    %cst = arith.constant dense<0.000000e+00> : vector<128xf32>
    %1 = vector.multi_reduction <add>, %0, %cst [0] : vector<64x128xf32> to vector<128xf32>
    %2 = vector.shape_cast %1 : vector<128xf32> to vector<1x128xf32>
    %c0_1 = arith.constant 0 : index
    %c0_2 = arith.constant 0 : index
    %3 = vector.load %arg17[%c0_1, %c0_2] : memref<1x384xf32, #tpu.memory_space<vmem>>, vector<1x128xf32>
    tpu.vector_store %arg17[%c0_1, %c0_2], %2 {strides = array<i32>} : memref<1x384xf32, #tpu.memory_space<vmem>>, vector<1x128xf32>,
    %c0_3 = arith.constant 0 : index
    %c0_4 = arith.constant 0 : index
    %c0_5 = arith.constant 0 : index
    %4 = vector.load %arg0[%c0_3, %c0_4, %c0_5] : memref<2x64x64xbf16, #tpu.memory_space<vmem>>, vector<1x64x64xbf16>
    %5 = vector.shape_cast %4 : vector<1x64x64xbf16> to vector<64x64xbf16>
    %6 = arith.truncf %0 : vector<64x128xf32> to vector<64x128xbf16>
    %cst_6 = arith.constant dense<0.000000e+00> : vector<64x128xf32>
    %7 = tpu.matmul %5, %6, %cst_6 {dimension_numbers = #tpu.dot_dimension_numbers<[1], [0], [0], [1], [0, 0, 1, 1], [], []>} : vector<64x64xbf16>, vector<64x128xbf16>, vector<64x128xf32> -> vector<64x128xf32>
    %8 = arith.truncf %7 : vector<64x128xf32> to vector<64x128xbf16>
    %c0_7 = arith.constant 0 : index
    %c0_8 = arith.constant 0 : index
    %9 = vector.load %arg2[%c0_7, %c0_8] : memref<128x128xbf16, #tpu.memory_space<vmem>>, vector<128x128xbf16>
    %cst_9 = arith.constant dense<0.000000e+00> : vector<64x128xf32>
    %10 = tpu.matmul %8, %9, %cst_9 {dimension_numbers = #tpu.dot_dimension_numbers<[1], [0], [0], [1], [0, 0, 1, 1], [], []>} : vector<64x128xbf16>, vector<128x128xbf16>, vector<64x128xf32> -> vector<64x128xf32>
    %c0_10 = arith.constant 0 : index
    %c0_11 = arith.constant 0 : index
    %11 = vector.load %arg3[%c0_10, %c0_11] : memref<1x128xf32, #tpu.memory_space<vmem>>, vector<1x128xf32>
    %12 = vector.broadcast %11 : vector<1x128xf32> to vector<64x128xf32>
    %13 = arith.addf %10, %12 : vector<64x128xf32>
    %cst_12 = arith.constant 0.000000e+00 : f32
    %14 = vector.broadcast %cst_12 : f32 to vector<64x128xf32>
    %15 = arith.maximumf %13, %14 : vector<64x128xf32>
    %16 = arith.truncf %15 : vector<64x128xf32> to vector<64x128xbf16>
    %c0_13 = arith.constant 0 : index
    %c0_14 = arith.constant 0 : index
    %17 = vector.load %arg4[%c0_13, %c0_14] : memref<128x128xbf16, #tpu.memory_space<vmem>>, vector<128x128xbf16>
    %cst_15 = arith.constant dense<0.000000e+00> : vector<64x128xf32>
    %18 = tpu.matmul %16, %17, %cst_15 {dimension_numbers = #tpu.dot_dimension_numbers<[1], [0], [0], [1], [0, 0, 1, 1], [], []>} : vector<64x128xbf16>, vector<128x128xbf16>, vector<64x128xf32> -> vector<64x128xf32>
    %c0_16 = arith.constant 0 : index
    %c0_17 = arith.constant 0 : index
    %19 = vector.load %arg5[%c0_16, %c0_17] : memref<1x128xf32, #tpu.memory_space<vmem>>, vector<1x128xf32>
    %20 = vector.broadcast %19 : vector<1x128xf32> to vector<64x128xf32>
    %21 = arith.addf %18, %20 : vector<64x128xf32>
    %cst_18 = arith.constant 0.000000e+00 : f32
    %22 = vector.broadcast %cst_18 : f32 to vector<64x128xf32>
    %23 = arith.maximumf %21, %22 : vector<64x128xf32>
    %c0_19 = arith.constant 0 : index
    %c0_20 = arith.constant 0 : index
    %24 = vector.load %arg6[%c0_19, %c0_20] : memref<1x128xf32, #tpu.memory_space<vmem>>, vector<1x128xf32>
    %25 = vector.broadcast %24 : vector<1x128xf32> to vector<64x128xf32>
    %26 = arith.mulf %23, %25 : vector<64x128xf32>
    %c0_21 = arith.constant 0 : index
    %c0_22 = arith.constant 0 : index
    %27 = vector.load %arg7[%c0_21, %c0_22] : memref<1x128xf32, #tpu.memory_space<vmem>>, vector<1x128xf32>
    %28 = vector.broadcast %27 : vector<1x128xf32> to vector<64x128xf32>
    %29 = arith.addf %26, %28 : vector<64x128xf32>
    %cst_23 = arith.constant 0.000000e+00 : f32
    %30 = vector.broadcast %cst_23 : f32 to vector<64x128xf32>
    %31 = arith.maximumf %29, %30 : vector<64x128xf32>
    %cst_24 = arith.constant dense<0.000000e+00> : vector<128xf32>
    %32 = vector.multi_reduction <add>, %31, %cst_24 [0] : vector<64x128xf32> to vector<128xf32>
    %33 = vector.shape_cast %32 : vector<128xf32> to vector<1x128xf32>
    %c0_25 = arith.constant 0 : index
    %c128 = arith.constant 128 : index
    %34 = vector.load %arg17[%c0_25, %c128] : memref<1x384xf32, #tpu.memory_space<vmem>>, vector<1x128xf32>
    tpu.vector_store %arg17[%c0_25, %c128], %33 {strides = array<i32>} : memref<1x384xf32, #tpu.memory_space<vmem>>, vector<1x128xf32>,
    %c1 = arith.constant 1 : index
    %c0_26 = arith.constant 0 : index
    %c0_27 = arith.constant 0 : index
    %35 = vector.load %arg0[%c1, %c0_26, %c0_27] : memref<2x64x64xbf16, #tpu.memory_space<vmem>>, vector<1x64x64xbf16>
    %36 = vector.shape_cast %35 : vector<1x64x64xbf16> to vector<64x64xbf16>
    %37 = arith.truncf %31 : vector<64x128xf32> to vector<64x128xbf16>
    %cst_28 = arith.constant dense<0.000000e+00> : vector<64x128xf32>
    %38 = tpu.matmul %36, %37, %cst_28 {dimension_numbers = #tpu.dot_dimension_numbers<[1], [0], [0], [1], [0, 0, 1, 1], [], []>} : vector<64x64xbf16>, vector<64x128xbf16>, vector<64x128xf32> -> vector<64x128xf32>
    %39 = arith.truncf %38 : vector<64x128xf32> to vector<64x128xbf16>
    %c0_29 = arith.constant 0 : index
    %c0_30 = arith.constant 0 : index
    %40 = vector.load %arg8[%c0_29, %c0_30] : memref<128x128xbf16, #tpu.memory_space<vmem>>, vector<128x128xbf16>
    %cst_31 = arith.constant dense<0.000000e+00> : vector<64x128xf32>
    %41 = tpu.matmul %39, %40, %cst_31 {dimension_numbers = #tpu.dot_dimension_numbers<[1], [0], [0], [1], [0, 0, 1, 1], [], []>} : vector<64x128xbf16>, vector<128x128xbf16>, vector<64x128xf32> -> vector<64x128xf32>
    %c0_32 = arith.constant 0 : index
    %c0_33 = arith.constant 0 : index
    %42 = vector.load %arg9[%c0_32, %c0_33] : memref<1x128xf32, #tpu.memory_space<vmem>>, vector<1x128xf32>
    %43 = vector.broadcast %42 : vector<1x128xf32> to vector<64x128xf32>
    %44 = arith.addf %41, %43 : vector<64x128xf32>
    %cst_34 = arith.constant 0.000000e+00 : f32
    %45 = vector.broadcast %cst_34 : f32 to vector<64x128xf32>
    %46 = arith.maximumf %44, %45 : vector<64x128xf32>
    %47 = arith.truncf %46 : vector<64x128xf32> to vector<64x128xbf16>
    %c0_35 = arith.constant 0 : index
    %c0_36 = arith.constant 0 : index
    %48 = vector.load %arg10[%c0_35, %c0_36] : memref<128x128xbf16, #tpu.memory_space<vmem>>, vector<128x128xbf16>
    %cst_37 = arith.constant dense<0.000000e+00> : vector<64x128xf32>
    %49 = tpu.matmul %47, %48, %cst_37 {dimension_numbers = #tpu.dot_dimension_numbers<[1], [0], [0], [1], [0, 0, 1, 1], [], []>} : vector<64x128xbf16>, vector<128x128xbf16>, vector<64x128xf32> -> vector<64x128xf32>
    %c0_38 = arith.constant 0 : index
    %c0_39 = arith.constant 0 : index
    %50 = vector.load %arg11[%c0_38, %c0_39] : memref<1x128xf32, #tpu.memory_space<vmem>>, vector<1x128xf32>
    %51 = vector.broadcast %50 : vector<1x128xf32> to vector<64x128xf32>
    %52 = arith.addf %49, %51 : vector<64x128xf32>
    %cst_40 = arith.constant 0.000000e+00 : f32
    %53 = vector.broadcast %cst_40 : f32 to vector<64x128xf32>
    %54 = arith.maximumf %52, %53 : vector<64x128xf32>
    %c0_41 = arith.constant 0 : index
    %c0_42 = arith.constant 0 : index
    %55 = vector.load %arg12[%c0_41, %c0_42] : memref<1x128xf32, #tpu.memory_space<vmem>>, vector<1x128xf32>
    %56 = vector.broadcast %55 : vector<1x128xf32> to vector<64x128xf32>
    %57 = arith.mulf %54, %56 : vector<64x128xf32>
    %c0_43 = arith.constant 0 : index
    %c0_44 = arith.constant 0 : index
    %58 = vector.load %arg13[%c0_43, %c0_44] : memref<1x128xf32, #tpu.memory_space<vmem>>, vector<1x128xf32>
    %59 = vector.broadcast %58 : vector<1x128xf32> to vector<64x128xf32>
    %60 = arith.addf %57, %59 : vector<64x128xf32>
    %cst_45 = arith.constant 0.000000e+00 : f32
    %61 = vector.broadcast %cst_45 : f32 to vector<64x128xf32>
    %62 = arith.maximumf %60, %61 : vector<64x128xf32>
    %cst_46 = arith.constant dense<0.000000e+00> : vector<128xf32>
    %63 = vector.multi_reduction <add>, %62, %cst_46 [0] : vector<64x128xf32> to vector<128xf32>
    %64 = vector.shape_cast %63 : vector<128xf32> to vector<1x128xf32>
    %c0_47 = arith.constant 0 : index
    %c256 = arith.constant 256 : index
    %65 = vector.load %arg17[%c0_47, %c256] : memref<1x384xf32, #tpu.memory_space<vmem>>, vector<1x128xf32>
    tpu.vector_store %arg17[%c0_47, %c256], %64 {strides = array<i32>} : memref<1x384xf32, #tpu.memory_space<vmem>>, vector<1x128xf32>,
    %c0_48 = arith.constant 0 : index
    %c0_49 = arith.constant 0 : index
    %66 = vector.load %arg17[%c0_48, %c0_49] : memref<1x384xf32, #tpu.memory_space<vmem>>, vector<1x384xf32>
    %c0_50 = arith.constant 0 : index
    %c0_51 = arith.constant 0 : index
    %67 = vector.load %arg14[%c0_50, %c0_51] : memref<384x128xf32, #tpu.memory_space<vmem>>, vector<384x128xf32>
    %cst_52 = arith.constant dense<0.000000e+00> : vector<1x128xf32>
    %68 = tpu.matmul %66, %67, %cst_52 {dimension_numbers = #tpu.dot_dimension_numbers<[1], [0], [0], [1], [0, 0, 1, 1], [], []>} : vector<1x384xf32>, vector<384x128xf32>, vector<1x128xf32> -> vector<1x128xf32>
    %c0_53 = arith.constant 0 : index
    %c0_54 = arith.constant 0 : index
    %69 = vector.load %arg15[%c0_53, %c0_54] : memref<1x128xf32, #tpu.memory_space<vmem>>, vector<1x128xf32>
    %70 = arith.addf %68, %69 : vector<1x128xf32>
    %c0_55 = arith.constant 0 : index
    %c0_56 = arith.constant 0 : index
    %71 = vector.load %arg16[%c0_55, %c0_56] : memref<1x128xf32, #tpu.memory_space<vmem>>, vector<1x128xf32>
    tpu.vector_store %arg16[%c0_55, %c0_56], %70 {strides = array<i32>} : memref<1x128xf32, #tpu.memory_space<vmem>>, vector<1x128xf32>,
    return
  }
}

</mosaic_0001>

<bundles_post_ra>
// kernel: tpu_custom_call.1
= control target key start
LH: loop header
LB: loop body
LE: loop exit
PB: predicated region body
PF: predicated region fallthrough
CT: control target
= control target key end

     0   :  { %s2088_s0 = inlined_call_operand.hbm [shape: bf16[2,64,64], index: 0, kind: input, shape index: {}]   ;;  %s2089_s1 = inlined_call_operand.hbm [shape: f32[64,128], index: 1, kind: input, shape index: {}]   ;;  %s2090_s2 = inlined_call_operand.hbm [shape: bf16[128,128], index: 2, kind: input, shape index: {}]   ;;  %s2091_s3 = inlined_call_operand.vmem [shape: f32[1,128], index: 3, kind: input, shape index: {}]   ;;  %s2092_s4 = inlined_call_operand.hbm [shape: bf16[128,128], index: 4, kind: input, shape index: {}]   ;;  %s2093_s5 = inlined_call_operand.vmem [shape: f32[1,128], index: 5, kind: input, shape index: {}]   ;;  %s2094_s6 = inlined_call_operand.vmem [shape: f32[1,128], index: 6, kind: input, shape index: {}]   ;;  %s2095_s7 = inlined_call_operand.vmem [shape: f32[1,128], index: 7, kind: input, shape index: {}]   ;;  %s2096_s8 = inlined_call_operand.hbm [shape: bf16[128,128], index: 8, kind: input, shape index: {}]   ;;  %s2097_s9 = inlined_call_operand.vmem [shape: f32[1,128], index: 9, kind: input, shape index: {}]   ;;  %s2098_s10 = inlined_call_operand.hbm [shape: bf16[128,128], index: 10, kind: input, shape index: {}]   ;;  %s2099_s11 = inlined_call_operand.vmem [shape: f32[1,128], index: 11, kind: input, shape index: {}]   ;;  %s2100_s12 = inlined_call_operand.vmem [shape: f32[1,128], index: 12, kind: input, shape index: {}]   ;;  %s2101_s13 = inlined_call_operand.vmem [shape: f32[1,128], index: 13, kind: input, shape index: {}]   ;;  %s2102_s14 = inlined_call_operand.hbm [shape: f32[384,128], index: 14, kind: input, shape index: {}]   ;;  %s2103_s15 = inlined_call_operand.vmem [shape: f32[1,128], index: 15, kind: input, shape index: {}]   ;;  %s2104_s16 = inlined_call_operand.hbm [shape: f32[1,128], index: 16, kind: output, shape index: {}]  }
   0x1   :  { %2105 = sst [smem:[#allocation21_spill]] %s2088_s0 }
   0x2   :  { %21 = vsyncpa [#allocation4], 0 }
   0x3   :  { %22 = vsyncpa [#allocation7], 0 }
   0x4   :  { %23 = vsyncpa [#allocation10], 0 }
   0x5   :  { %24 = vsyncpa [#allocation13], 0 }
   0x6   :  { %25 = vsyncpa [#allocation5], 0  ;;  %s1876_s21 = smov [#allocation6]  }
   0x7   :  { %s43_s22 = sshll.u32 %s1876_s21, 4  ;;  %s44_s22 = int_to_ptr.vmem [resolvable:$true] %s43_s22 }
   0x8   :  { %s1714_s23 = scalar_lea.vmem %s44_s22, 1024  ;;  %p1719_p1 = scmp.lt.s32.totalorder %s44_s22, %s44_s22 }
   0x9   :  { %p1715_p0 = scmp.ne.s32.totalorder %s44_s22, %s1714_s23  ;;  %p1720_p2 = scmp.lt.s32.totalorder %s1714_s23, %s1714_s23 }
   0xb   :  { %p1721_p3 = por %p1720_p2, %p1719_p1 }
   0xd   :  { %p1722_p4 = pnand %p1721_p3, %p1715_p0 }
   0xf   :  { %1725 = shalt.err (!%p1722_p4)
}
  0x10   :  { %s1877_s24 = smov 128   ;;  %s1878_s25 = smov 8  }
  0x11   :  { %49 = dma.hbm_to_vmem [thread:$0]  %s2089_s1, 1024, %s44_s22, [#allocation7], %s1877_s24, %s1877_s24, %s1878_s25  }
  0x12   :  { %s1879_s28 = smov [#allocation9]   ;;  %s1880_s30 = smov [#allocation12]  }
  0x13   :  { %s69_s29 = sshll.u32 %s1879_s28, 4  ;;  %s101_s0 = sshll.u32 %s1880_s30, 4  ;;  %s70_s29 = int_to_ptr.vmem [resolvable:$true] %s69_s29  ;;  %s102_s0 = int_to_ptr.vmem [resolvable:$true] %s101_s0 }
  0x14   :  { %s1734_s17 = scalar_lea.vmem %s70_s29, 1024  ;;  %p1739_p6 = scmp.lt.s32.totalorder %s70_s29, %s70_s29 }
  0x15   :  { %p1735_p5 = scmp.ne.s32.totalorder %s70_s29, %s1734_s17  ;;  %p1740_p7 = scmp.lt.s32.totalorder %s1734_s17, %s1734_s17 }
  0x17   :  { %p1741_p8 = por %p1740_p7, %p1739_p6 }
  0x19   :  { %p1742_p9 = pnand %p1741_p8, %p1735_p5 }
  0x1b   :  { %1745 = shalt.err (!%p1742_p9)
}
  0x1c   :  { %s1881_s18 = smov 64   ;;  %s1882_s19 = smov 4  }
  0x1d   :  { %75 = dma.hbm_to_vmem [thread:$0]  %s2092_s4, 1024, %s70_s29, [#allocation10], %s1881_s18, %s1881_s18, %s1882_s19  }
  0x1e   :  { %s1754_s1 = scalar_lea.vmem %s102_s0, 1024  ;;  %p1759_p11 = scmp.lt.s32.totalorder %s102_s0, %s102_s0 }
  0x1f   :  { %p1755_p10 = scmp.ne.s32.totalorder %s102_s0, %s1754_s1  ;;  %p1760_p12 = scmp.lt.s32.totalorder %s1754_s1, %s1754_s1 }
  0x21   :  { %p1761_p13 = por %p1760_p12, %p1759_p11 }
  0x23   :  { %p1762_p0 = pnand %p1761_p13, %p1755_p10 }
  0x25   :  { %1765 = shalt.err (!%p1762_p0)
}
  0x26   :  { %107 = dma.hbm_to_vmem [thread:$0]  %s2098_s10, 1024, %s102_s0, [#allocation13], %s1881_s18, %s1881_s18, %s1882_s19  }
  0x27   :  { %s1883_s26 = smov [#allocation3]   ;;  %s1884_s28 = smov [#allocation8]  }
  0x28   :  { %s31_s27 = sshll.u32 %s1883_s26, 4  ;;  %s55_s4 = sshll.u32 %s1884_s28, 4  ;;  %s32_s27 = int_to_ptr.vmem [resolvable:$true] %s31_s27  ;;  %s56_s4 = int_to_ptr.vmem [resolvable:$true] %s55_s4 }
  0x29   :  { %s1774_s29 = scalar_lea.vmem %s32_s27, 1024  ;;  %p1779_p2 = scmp.lt.s32.totalorder %s32_s27, %s32_s27 }
  0x2a   :  { %p1775_p1 = scmp.ne.s32.totalorder %s32_s27, %s1774_s29  ;;  %p1780_p3 = scmp.lt.s32.totalorder %s1774_s29, %s1774_s29 }
  0x2c   :  { %p1781_p4 = por %p1780_p3, %p1779_p2 }
  0x2e   :  { %p1782_p5 = pnand %p1781_p4, %p1775_p1 }
  0x30   :  { %1785 = shalt.err (!%p1782_p5)
}
  0x31   :  { %s2106_s20 = sld [smem:[#allocation21_spill]]  ;;  %s1794_s10 = scalar_lea.vmem %s56_s4, 1024 }
  0x32   :  { %p1795_p6 = scmp.ne.s32.totalorder %s56_s4, %s1794_s10  ;;  %p1799_p7 = scmp.lt.s32.totalorder %s56_s4, %s56_s4 }
  0x33   :  { %p1800_p8 = scmp.lt.s32.totalorder %s1794_s10, %s1794_s10 }
  0x35   :  { %p1801_p9 = por %p1800_p8, %p1799_p7 }
  0x37   :  { %37 = dma.hbm_to_vmem [thread:$0]  %s2106_s20, 1024, %s32_s27, [#allocation4], %s1881_s18, %s1881_s18, %s1882_s19  }
  0x38   :  { %p1802_p10 = pnand %p1801_p9, %p1795_p6 }
  0x3a   :  { %1805 = shalt.err (!%p1802_p10)
}
  0x3b   :  { %61 = dma.hbm_to_vmem [thread:$0]  %s2090_s2, 1024, %s56_s4, [#allocation7], %s1881_s18, %s1881_s18, %s1882_s19  }
  0x3c   :  { %s1885_s1 = smov [#allocation11]   ;;  %s1886_s23 = smov [#allocation14]  }
  0x3d   :  { %s87_s22 = sshll.u32 %s1885_s1, 4  ;;  %s119_s26 = sshll.u32 %s1886_s23, 4  ;;  %s88_s22 = int_to_ptr.vmem [resolvable:$true] %s87_s22  ;;  %s120_s26 = int_to_ptr.vmem [resolvable:$true] %s119_s26 }
  0x3e   :  { %s1814_s27 = scalar_lea.vmem %s88_s22, 1024  ;;  %p1819_p12 = scmp.lt.s32.totalorder %s88_s22, %s88_s22 }
  0x3f   :  { %p1815_p11 = scmp.ne.s32.totalorder %s88_s22, %s1814_s27  ;;  %p1820_p13 = scmp.lt.s32.totalorder %s1814_s27, %s1814_s27 }
  0x41   :  { %p1821_p0 = por %p1820_p13, %p1819_p12 }
  0x43   :  { %p1822_p1 = pnand %p1821_p0, %p1815_p11 }
  0x45   :  { %1825 = shalt.err (!%p1822_p1)
}
  0x46   :  { %93 = dma.hbm_to_vmem [thread:$0]  %s2096_s8, 1024, %s88_s22, [#allocation10], %s1881_s18, %s1881_s18, %s1882_s19  }
  0x47   :  { %s1834_s2 = scalar_lea.vmem %s120_s26, 6144  ;;  %p1839_p3 = scmp.lt.s32.totalorder %s120_s26, %s120_s26 }
  0x48   :  { %p1835_p2 = scmp.ne.s32.totalorder %s120_s26, %s1834_s2  ;;  %p1840_p4 = scmp.lt.s32.totalorder %s1834_s2, %s1834_s2 }
  0x4a   :  { %p1841_p5 = por %p1840_p4, %p1839_p3 }
  0x4c   :  { %p1842_p6 = pnand %p1841_p5, %p1835_p2 }
  0x4e   :  { %1845 = shalt.err (!%p1842_p6)
}
  0x4f   :  { %125 = dma.hbm_to_vmem [thread:$0]  %s2102_s14, 6144, %s120_s26, [#allocation13], %s1877_s24, %s1877_s24, %s1878_s25  }
  0x50   :  { %1866 = dma.done.wait [#allocation4], 1024  }
  0x51   :  { %1867 = vsyncadd [#allocation4], 4294966272 }
  0x52   :  { %1868 = dma.done.wait [#allocation7], 2048  }
  0x53   :  { %1869 = vsyncadd [#allocation7], 4294965248 }
  0x54   :  { %1870 = dma.done.wait [#allocation10], 2048  }
  0x55   :  { %1871 = vsyncadd [#allocation10], 4294965248 }
  0x56   :  { %1872 = dma.done.wait [#allocation13], 7168  }
  0x57   :  { %1873 = vsyncadd [#allocation13], 4294960128  ;;  %v150_v0 = vld [vmem:[#allocation6] sm:$0xff]  ;;  %v151_v1 = vld [vmem:[#allocation6 + $0x8] sm:$0xff]  ;;  %vm208_vm0 = vcmask 523264   ;;  %vm1888_vm2 = vmmov 0  }
  0x58   :  { %v152_v2 = vld [vmem:[#allocation6 + $0x10] sm:$0xff]  ;;  %v154_v3 = vld [vmem:[#allocation6 + $0x20] sm:$0xff]  ;;  %v155_v4 = vld [vmem:[#allocation6 + $0x28] sm:$0xff]  ;;  %v158_v5 = vadd.f32 %v151_v1, %v150_v0  ;;  %v184_v20 = vpack.c.bf16 %v151_v1, %v150_v0  ;;  %s1889_s21 = smov [#allocation15]  }
  0x59   :  { %v156_v6 = vld [vmem:[#allocation6 + $0x30] sm:$0xff]  ;;  %v157_v7 = vld [vmem:[#allocation6 + $0x38] sm:$0xff]  ;;  %v186_v10 = vpack.c.bf16 %v155_v4, %v154_v3  ;;  %v1666_v11 = vld [vmem:[#allocation3] sm:$0xff]   ;;  %s1305_s1 = sshll.u32 %s1889_s21, 4  ;;  %s1306_s1 = int_to_ptr.vmem [resolvable:$true] %s1305_s1 }
  0x5a   :  { %v159_v8 = vadd.f32 %v158_v5, %v152_v2  ;;  %v187_v9 = vpack.c.bf16 %v157_v7, %v156_v6  ;;  %v153_v12 = vld [vmem:[#allocation6 + $0x18] sm:$0xff]  ;;  %1497 = vmatprep.mubr.msk.bf16.mxu0 %vm208_vm0, %v1666_v11  ;;  %v1671_v17 = vld [vmem:[#allocation8 + $0x30] sm:$0xff]   ;;  %v1672_v21 = vld [vmem:[#allocation8 + $0x28] sm:$0xff]   ;;  %s1846_s22 = scalar_lea.vmem %s1306_s1, 16  ;;  %s1850_s23 = scalar_lea.vmem %s1306_s1, 32 }
  0x5b   :  { %v185_v15 = vpack.c.bf16 %v153_v12, %v152_v2  ;;  %v1670_v16 = vld [vmem:[#allocation8 + $0x38] sm:$0xff]   ;;  %v1667_v23 = vld [vmem:[#allocation3 + $0x8] sm:$0xff]   ;;  %v1673_v24 = vld [vmem:[#allocation8 + $0x20] sm:$0xff]   ;;  %p1847_p7 = scmp.ne.s32.totalorder %s1306_s1, %s1846_s22  ;;  %p1851_p8 = scmp.lt.s32.totalorder %s1306_s1, %s1306_s1 }
  0x5c   :  { %v160_v13 = vadd.f32 %v159_v8, %v153_v12  ;;  %1489 = vmatprep.subr.bf16.mxu0 %v187_v9  ;;  %1505 = vmatprep.subr.bf16.mxu1 %v1670_v16  ;;  %v1668_v25 = vld [vmem:[#allocation3 + $0x10] sm:$0xff]   ;;  %v1674_v26 = vld [vmem:[#allocation8 + $0x18] sm:$0xff]   ;;  %v1676_v29 = vld [vmem:[#allocation8 + $0x8] sm:$0xff]   ;;  %p1852_p9 = scmp.lt.s32.totalorder %s1850_s23, %s1846_s22 }
  0x5d   :  { %1490 = vmatpush3.bf16.msra.mxu0 %v187_v9  ;;  %1506 = vmatpush3.bf16.msra.mxu1 %v1670_v16  ;;  %v1669_v27 = vld [vmem:[#allocation3 + $0x18] sm:$0xff]   ;;  %v1675_v28 = vld [vmem:[#allocation8 + $0x10] sm:$0xff]   ;;  %v1677_v30 = vld [vmem:[#allocation8] sm:$0xff]  }
  0x5e   :  { %v161_v14 = vadd.f32 %v160_v13, %v154_v3  ;;  %1491 = vmatprep.subr.bf16.mxu0 %v186_v10  ;;  %1507 = vmatprep.subr.bf16.mxu1 %v1671_v17  ;;  %v1678_v31 = vld [vmem:[#allocation9 + $0x38] sm:$0xff]   ;;  %v1679_v32 = vld [vmem:[#allocation9 + $0x30] sm:$0xff]   ;;  %v1680_v33 = vld [vmem:[#allocation9 + $0x28] sm:$0xff]   ;;  %p1853_p10 = por %p1852_p9, %p1851_p8 }
  0x5f   :  { %v1681_v34 = vld [vmem:[#allocation9 + $0x20] sm:$0xff]   ;;  %v1682_v35 = vld [vmem:[#allocation9 + $0x18] sm:$0xff]   ;;  %v1683_v48 = vld [vmem:[#allocation9 + $0x10] sm:$0xff]  }
  0x60   :  { %v162_v18 = vadd.f32 %v161_v14, %v155_v4  ;;  %v1684_v49 = vld [vmem:[#allocation9 + $0x8] sm:$0xff]   ;;  %v1685_v50 = vld [vmem:[#allocation9] sm:$0xff]   ;;  %v1325_v53 = vld [vmem:[%s2091_s3] ss:$0 sm:$0xff]  ;;  %p1854_p11 = pnand %p1853_p10, %p1847_p7 }
  0x61   :  { %1492 = vmatpush3.bf16.msra.mxu0 %v186_v10  ;;  %1508 = vmatpush3.bf16.msra.mxu1 %v1671_v17 }
  0x62   :  { %v163_v19 = vadd.f32 %v162_v18, %v156_v6  ;;  %1493 = vmatprep.subr.bf16.mxu0 %v185_v15  ;;  %1509 = vmatprep.subr.bf16.mxu1 %v1672_v21 }
  0x64   :  { %v2018_v22 = vadd.f32 %v163_v19, %v157_v7 }
  0x65   :  { %1494 = vmatpush3.bf16.msra.mxu0 %v185_v15  ;;  %1510 = vmatpush3.bf16.msra.mxu1 %v1672_v21  ;;  %v1686_v21 = vld [vmem:[#allocation3 + $0x20] sm:$0xff]  }
  0x66   :  { %1495 = vmatprep.subr.bf16.mxu0 %v184_v20  ;;  %1511 = vmatprep.subr.bf16.mxu1 %v1673_v24  ;;  %v165_v16 = vrot.slane %v2018_v22, 4 }
  0x68   :  { %v166_v17 = vadd.f32 %v165_v16, %v2018_v22  ;;  %v1692_v22 = vld [vmem:[#allocation11 + $0x28] sm:$0xff]  }
  0x69   :  { %1496 = vmatpush3.bf16.msra.mxu0 %v184_v20  ;;  %1512 = vmatpush3.bf16.msra.mxu1 %v1673_v24  ;;  %v171_v24 = vlaneseq }
  0x6a   :  { %1513 = vmatprep.subr.bf16.mxu1 %v1674_v26  ;;  %1529 = vmatprep.subr.bf16.mxu0 %v1678_v31  ;;  %v167_v18 = vrot.slane %v166_v17, 2 }
  0x6b   :  { %vm2030_vm1 = vcmp.lt.s32.totalorder %v171_v24, 128 }
  0x6c   :  { %1498 = vmatmul.mubr.msk.bf16.vlgmr.msra.gmra.mxu0 %vm208_vm0, %v1667_v23  ;;  %v168_v19 = vadd.f32 %v167_v18, %v166_v17 }
  0x6d   :  { %1501 = vmatprep.mubr.msk.bf16.mxu0 %vm208_vm0, %v1668_v25  ;;  %1514 = vmatpush3.bf16.msra.mxu1 %v1674_v26  ;;  %v1690_v26 = vld [vmem:[#allocation11 + $0x38] sm:$0xff]  }
  0x6e   :  { %1515 = vmatprep.subr.bf16.mxu1 %v1675_v28  ;;  %1530 = vmatpush3.bf16.msra.mxu0 %v1678_v31  ;;  %v169_v20 = vrot.slane %v168_v19, 1  ;;  %v1334_v31 = vld [vmem:[%s2093_s5] ss:$0 sm:$0xff] }
  0x6f   :  { %1531 = vmatprep.subr.bf16.mxu0 %v1679_v32  ;;  %v1141_v25 = vld [vmem:[%s2103_s15] sm:$0x1] }
  0x70   :  { %v170_v23 = vadd.f32 %v169_v20, %v168_v19 }
  0x71   :  { %1516 = vmatpush3.bf16.msra.mxu1 %v1675_v28  ;;  %v1693_v28 = vld [vmem:[#allocation11 + $0x20] sm:$0xff]  }
  0x72   :  { %1517 = vmatprep.subr.bf16.mxu1 %v1676_v29  ;;  %1532 = vmatpush3.bf16.msra.mxu0 %v1679_v32  ;;  %175 = vst.msk [vmem:[#allocation2] sm:$0x1] %vm2030_vm1, %v170_v23 }
  0x73   :  { %1533 = vmatprep.subr.bf16.mxu0 %v1680_v33 }
  0x74   :  { %1502 = vmatmul.mubr.msk.bf16.gmra.mxu0 %vm208_vm0, %v1669_v27  ;;  %v1691_v27 = vld [vmem:[#allocation11 + $0x30] sm:$0xff]  }
  0x75   :  { %1518 = vmatpush3.bf16.msra.mxu1 %v1676_v29  ;;  %v1694_v29 = vld [vmem:[#allocation11 + $0x18] sm:$0xff]  }
  0x76   :  { %1519 = vmatprep.subr.bf16.mxu1 %v1677_v30  ;;  %1534 = vmatpush3.bf16.msra.mxu0 %v1680_v33 }
  0x77   :  { %1535 = vmatprep.subr.bf16.mxu0 %v1681_v34 }
  0x79   :  { %1520 = vmatpush3.bf16.msra.mxu1 %v1677_v30  ;;  %v1695_v30 = vld [vmem:[#allocation11 + $0x10] sm:$0xff]  }
  0x7a   :  { %1536 = vmatpush3.bf16.msra.mxu0 %v1681_v34 }
  0x7b   :  { %1537 = vmatprep.subr.bf16.mxu0 %v1682_v35 }
  0x7e   :  { %1538 = vmatpush3.bf16.msra.mxu0 %v1682_v35 }
  0x7f   :  { %1539 = vmatprep.subr.bf16.mxu0 %v1683_v48 }
  0x82   :  { %1540 = vmatpush3.bf16.msra.mxu0 %v1683_v48 }
  0x83   :  { %1541 = vmatprep.subr.bf16.mxu0 %v1684_v49 }
  0x86   :  { %1542 = vmatpush3.bf16.msra.mxu0 %v1684_v49 }
  0x87   :  { %1543 = vmatprep.subr.bf16.mxu0 %v1685_v50 }
  0x8a   :  { %1544 = vmatpush3.bf16.msra.mxu0 %v1685_v50 }
  0x8b   :  { %1569 = vmatprep.subr.bf16.mxu0 %v1690_v26 }
 0x12c   :  { %v1499_v36 = vpop.f32.mrf.mxu0 }
 0x12e   :  { %v255_v37 = vpop.f32.mrf.mxu0 }
 0x130   :  { %v1500_v38 = vpop.f32.mrf.mxu0 }
 0x131   :  { %v287_v41 = vpack.c.bf16 %v1500_v38, %v1499_v36  ;;  %v1343_v38 = vld [vmem:[%s2094_s6] ss:$0 sm:$0xff] }
 0x132   :  { %v258_v39 = vpop.f32.mrf.mxu0 }
 0x133   :  { %v286_v40 = vpack.c.bf16 %v258_v39, %v255_v37 }
 0x134   :  { %v1503_v42 = vpop.f32.mrf.mxu0 }
 0x135   :  { %1521 = vmatprep.mubr.bf16.mxu1 %v286_v40 }
 0x136   :  { %v271_v43 = vpop.f32.mrf.mxu0  ;;  %1522 = vmatmul.mubr.bf16.vlgmr.msra.gmra.mxu1 %v287_v41 }
 0x138   :  { %v1504_v44 = vpop.f32.mrf.mxu0 }
 0x139   :  { %v289_v47 = vpack.c.bf16 %v1504_v44, %v1503_v42 }
 0x13a   :  { %v274_v45 = vpop.f32.mrf.mxu0 }
 0x13b   :  { %v288_v46 = vpack.c.bf16 %v274_v45, %v271_v43 }
 0x13d   :  { %1525 = vmatprep.mubr.bf16.mxu1 %v288_v46 }
 0x13e   :  { %1526 = vmatmul.mubr.bf16.gmra.mxu1 %v289_v47  ;;  %v1344_v47 = vld [vmem:[%s2095_s7] ss:$0 sm:$0xff] }
 0x13f   :  { %1561 = vmatprep.mubr.msk.bf16.mxu1 %vm208_vm0, %v1686_v21 }
 0x1f6   :  { %v1523_v51 = vpop.f32.mrf.mxu1 }
 0x1f7   :  { %v404_v57 = vadd.f32 %v1523_v51, %v1325_v53 }
 0x1f8   :  { %v395_v52 = vpop.f32.mrf.mxu1 }
 0x1f9   :  { %v396_v55 = vadd.f32 %v1325_v53, %v395_v52  ;;  %v428_v0 = vmax.f32 %v404_v57, 0.0 }
 0x1fa   :  { %v1524_v54 = vpop.f32.mrf.mxu1 }
 0x1fb   :  { %v407_v56 = vadd.f32 %v1524_v54, %v1325_v53  ;;  %v426_v62 = vmax.f32 %v396_v55, 0.0 }
 0x1fc   :  { %v398_v58 = vpop.f32.mrf.mxu1 }
 0x1fd   :  { %v399_v59 = vadd.f32 %v1325_v53, %v398_v58  ;;  %v429_v60 = vmax.f32 %v407_v56, 0.0 }
 0x1fe   :  { %v1527_v61 = vpop.f32.mrf.mxu1 }
 0x1ff   :  { %v427_v63 = vmax.f32 %v399_v59, 0.0  ;;  %v435_v3 = vpack.c.bf16 %v429_v60, %v428_v0  ;;  %v420_v7 = vadd.f32 %v1527_v61, %v1325_v53 }
 0x200   :  { %v411_v1 = vpop.f32.mrf.mxu1 }
 0x201   :  { %v434_v2 = vpack.c.bf16 %v427_v63, %v426_v62  ;;  %v412_v5 = vadd.f32 %v1325_v53, %v411_v1  ;;  %v432_v13 = vmax.f32 %v420_v7, 0.0 }
 0x202   :  { %v1528_v4 = vpop.f32.mrf.mxu1 }
 0x203   :  { %v423_v6 = vadd.f32 %v1528_v4, %v1325_v53  ;;  %1545 = vmatprep.mubr.bf16.mxu0 %v434_v2  ;;  %v430_v11 = vmax.f32 %v412_v5, 0.0 }
 0x204   :  { %v414_v8 = vpop.f32.mrf.mxu1  ;;  %1546 = vmatmul.mubr.bf16.vlgmr.msra.gmra.mxu0 %v435_v3 }
 0x205   :  { %v415_v9 = vadd.f32 %v1325_v53, %v414_v8  ;;  %v433_v10 = vmax.f32 %v423_v6, 0.0  ;;  %1570 = vmatpush3.bf16.msra.mxu0 %v1690_v26 }
 0x206   :  { %1571 = vmatprep.subr.bf16.mxu0 %v1691_v27 }
 0x207   :  { %v431_v12 = vmax.f32 %v415_v9, 0.0  ;;  %v437_v15 = vpack.c.bf16 %v433_v10, %v432_v13 }
 0x209   :  { %v436_v14 = vpack.c.bf16 %v431_v12, %v430_v11  ;;  %1572 = vmatpush3.bf16.msra.mxu0 %v1691_v27 }
 0x20a   :  { %1573 = vmatprep.subr.bf16.mxu0 %v1692_v22 }
 0x20b   :  { %1549 = vmatprep.mubr.bf16.mxu0 %v436_v14 }
 0x20c   :  { %1550 = vmatmul.mubr.bf16.gmra.mxu0 %v437_v15 }
 0x20d   :  { %1574 = vmatpush3.bf16.msra.mxu0 %v1692_v22 }
 0x20e   :  { %1575 = vmatprep.subr.bf16.mxu0 %v1693_v28 }
 0x211   :  { %1576 = vmatpush3.bf16.msra.mxu0 %v1693_v28 }
 0x212   :  { %1577 = vmatprep.subr.bf16.mxu0 %v1694_v29 }
 0x215   :  { %1578 = vmatpush3.bf16.msra.mxu0 %v1694_v29 }
 0x216   :  { %1579 = vmatprep.subr.bf16.mxu0 %v1695_v30 }
 0x219   :  { %1580 = vmatpush3.bf16.msra.mxu0 %v1695_v30 }
 0x2c4   :  { %v1547_v32 = vpop.f32.mrf.mxu0 }
 0x2c5   :  { %v552_v33 = vadd.f32 %v1547_v32, %v1334_v31 }
 0x2c6   :  { %v543_v34 = vpop.f32.mrf.mxu0 }
 0x2c7   :  { %v544_v35 = vadd.f32 %v1334_v31, %v543_v34  ;;  %v576_v36 = vmax.f32 %v552_v33, 0.0 }
 0x2c8   :  { %v1548_v37 = vpop.f32.mrf.mxu0 }
 0x2c9   :  { %v574_v39 = vmax.f32 %v544_v35, 0.0  ;;  %v555_v40 = vadd.f32 %v1548_v37, %v1334_v31  ;;  %v591_v45 = vmul.f32 %v1343_v38, %v576_v36  ;;  %v1687_v35 = vld [vmem:[#allocation3 + $0x28] sm:$0xff]   ;;  %v1688_v36 = vld [vmem:[#allocation3 + $0x30] sm:$0xff]  }
 0x2ca   :  { %v546_v41 = vpop.f32.mrf.mxu0 }
 0x2cb   :  { %v589_v42 = vmul.f32 %v1343_v38, %v574_v39  ;;  %v577_v43 = vmax.f32 %v555_v40, 0.0  ;;  %v547_v44 = vadd.f32 %v1334_v31, %v546_v41  ;;  %v606_v55 = vadd.f32 %v1344_v47, %v591_v45  ;;  %v1689_v39 = vld [vmem:[#allocation3 + $0x38] sm:$0xff]   ;;  %v1696_v40 = vld [vmem:[#allocation11 + $0x8] sm:$0xff]   ;;  %v1697_v41 = vld [vmem:[#allocation11] sm:$0xff]  }
 0x2cc   :  { %v1551_v46 = vpop.f32.mrf.mxu0  ;;  %1581 = vmatprep.subr.bf16.mxu0 %v1696_v40  ;;  %v1701_v45 = vld [vmem:[#allocation12 + $0x20] sm:$0xff]  }
 0x2cd   :  { %v575_v48 = vmax.f32 %v547_v44, 0.0  ;;  %v604_v49 = vadd.f32 %v1344_v47, %v589_v42  ;;  %v592_v50 = vmul.f32 %v1343_v38, %v577_v43  ;;  %v568_v51 = vadd.f32 %v1551_v46, %v1334_v31  ;;  %1582 = vmatpush3.bf16.msra.mxu0 %v1696_v40  ;;  %v1698_v42 = vld [vmem:[#allocation12 + $0x38] sm:$0xff]   ;;  %v1699_v43 = vld [vmem:[#allocation12 + $0x30] sm:$0xff]   ;;  %v1700_v44 = vld [vmem:[#allocation12 + $0x28] sm:$0xff]  }
 0x2ce   :  { %v559_v52 = vpop.f32.mrf.mxu0  ;;  %v614_v5 = vmax.f32 %v606_v55, 0.0  ;;  %1583 = vmatprep.subr.bf16.mxu0 %v1697_v41  ;;  %v1702_v46 = vld [vmem:[#allocation12 + $0x18] sm:$0xff]   ;;  %v1137_v40 = vld [vmem:[#allocation14 + $0x160] sm:$0xff] }
 0x2cf   :  { %v590_v53 = vmul.f32 %v1343_v38, %v575_v48  ;;  %v560_v54 = vadd.f32 %v1334_v31, %v559_v52  ;;  %v580_v56 = vmax.f32 %v568_v51, 0.0  ;;  %v612_v61 = vmax.f32 %v604_v49, 0.0 }
 0x2d0   :  { %v1552_v57 = vpop.f32.mrf.mxu0  ;;  %v607_v62 = vadd.f32 %v1344_v47, %v592_v50 }
 0x2d1   :  { %v605_v58 = vadd.f32 %v1344_v47, %v590_v53  ;;  %v578_v59 = vmax.f32 %v560_v54, 0.0  ;;  %v571_v60 = vadd.f32 %v1552_v57, %v1334_v31  ;;  %v595_v63 = vmul.f32 %v1343_v38, %v580_v56  ;;  %1584 = vmatpush3.bf16.msra.mxu0 %v1697_v41  ;;  %v1105_v41 = vld [vmem:[#allocation14 + $0x60] sm:$0xff] }
 0x2d2   :  { %v562_v0 = vpop.f32.mrf.mxu0  ;;  %v615_v11 = vmax.f32 %v607_v62, 0.0 }
 0x2d3   :  { %v613_v1 = vmax.f32 %v605_v58, 0.0  ;;  %v593_v2 = vmul.f32 %v1343_v38, %v578_v59  ;;  %v581_v3 = vmax.f32 %v571_v60, 0.0  ;;  %v563_v4 = vadd.f32 %v1334_v31, %v562_v0  ;;  %v1703_v59 = vld [vmem:[#allocation12 + $0x10] sm:$0xff]   ;;  %v1704_v60 = vld [vmem:[#allocation12 + $0x8] sm:$0xff]   ;;  %v1353_v0 = vld [vmem:[%s2097_s9] ss:$0 sm:$0xff] }
 0x2d4   :  { %v610_v6 = vadd.f32 %v1344_v47, %v595_v63  ;;  %v644_v29 = vpack.c.bf16 %v615_v11, %v614_v5 }
 0x2d5   :  { %v620_v7 = vadd.f32 %v613_v1, %v612_v61  ;;  %v608_v8 = vadd.f32 %v1344_v47, %v593_v2  ;;  %v596_v9 = vmul.f32 %v1343_v38, %v581_v3  ;;  %v579_v10 = vmax.f32 %v563_v4, 0.0 }
 0x2d6   :  { %v618_v15 = vmax.f32 %v610_v6, 0.0  ;;  %v643_v32 = vpack.c.bf16 %v613_v1, %v612_v61  ;;  %v1705_v61 = vld [vmem:[#allocation12] sm:$0xff]  }
 0x2d7   :  { %v621_v12 = vadd.f32 %v620_v7, %v614_v5  ;;  %v611_v13 = vadd.f32 %v1344_v47, %v596_v9  ;;  %v594_v14 = vmul.f32 %v1343_v38, %v579_v10  ;;  %v616_v16 = vmax.f32 %v608_v8, 0.0 }
 0x2d9   :  { %v622_v17 = vadd.f32 %v621_v12, %v615_v11  ;;  %v619_v18 = vmax.f32 %v611_v13, 0.0  ;;  %v609_v19 = vadd.f32 %v1344_v47, %v594_v14 }
 0x2db   :  { %v623_v20 = vadd.f32 %v622_v17, %v616_v16  ;;  %v617_v21 = vmax.f32 %v609_v19, 0.0  ;;  %v646_v23 = vpack.c.bf16 %v619_v18, %v618_v15 }
 0x2dd   :  { %v624_v26 = vadd.f32 %v623_v20, %v617_v21  ;;  %1553 = vmatprep.subr.bf16.mxu1 %v646_v23  ;;  %v645_v27 = vpack.c.bf16 %v617_v21, %v616_v16 }
 0x2de   :  { %1554 = vmatpush3.bf16.msra.mxu1 %v646_v23 }
 0x2df   :  { %v625_v22 = vadd.f32 %v624_v26, %v618_v15  ;;  %1555 = vmatprep.subr.bf16.mxu1 %v645_v27 }
 0x2e1   :  { %v626_v28 = vadd.f32 %v625_v22, %v619_v18 }
 0x2e2   :  { %1556 = vmatpush3.bf16.msra.mxu1 %v645_v27 }
 0x2e3   :  { %v627_v30 = vrot.slane %v626_v28, 4  ;;  %1557 = vmatprep.subr.bf16.mxu1 %v644_v29 }
 0x2e5   :  { %v628_v31 = vadd.f32 %v627_v30, %v626_v28  ;;  %v1124_v30 = vld [vmem:[#allocation14 + $0xf8] sm:$0xff] }
 0x2e6   :  { %1558 = vmatpush3.bf16.msra.mxu1 %v644_v29  ;;  %v1887_v29 = vmov 0.0   ;;  %1437 = vmatprep.subr.mxu0 %v1124_v30 }
 0x2e7   :  { %v629_v33 = vrot.slane %v628_v31, 2  ;;  %1559 = vmatprep.subr.bf16.mxu1 %v643_v32 }
 0x2e9   :  { %v630_v34 = vadd.f32 %v629_v33, %v628_v31  ;;  %v1140_v31 = vld [vmem:[#allocation14 + $0x178] sm:$0xff]  ;;  %v1123_v33 = vld [vmem:[#allocation14 + $0xf0] sm:$0xff] }
 0x2ea   :  { %1560 = vmatpush3.bf16.msra.mxu1 %v643_v32  ;;  %v1108_v32 = vld [vmem:[#allocation14 + $0x78] sm:$0xff] }
 0x2eb   :  { %v631_v37 = vrot.slane %v630_v34, 1  ;;  %1593 = vmatprep.subr.bf16.mxu1 %v1698_v42 }
 0x2ed   :  { %v632_v38 = vadd.f32 %v631_v37, %v630_v34  ;;  %1562 = vmatmul.mubr.msk.bf16.vlgmr.msra.gmra.mxu1 %vm208_vm0, %v1687_v35  ;;  %v1139_v34 = vld [vmem:[#allocation14 + $0x170] sm:$0xff]  ;;  %v1138_v37 = vld [vmem:[#allocation14 + $0x168] sm:$0xff] }
 0x2ee   :  { %1565 = vmatprep.mubr.msk.bf16.mxu1 %vm208_vm0, %v1688_v36  ;;  %1594 = vmatpush3.bf16.msra.mxu1 %v1698_v42  ;;  %v1107_v35 = vld [vmem:[#allocation14 + $0x70] sm:$0xff]  ;;  %v1122_v36 = vld [vmem:[#allocation14 + $0xe8] sm:$0xff]  ;;  %v1120_v42 = vld [vmem:[#allocation14 + $0xd8] sm:$0xff] }
 0x2ef   :  { %633 = vst.msk [vmem:[#allocation2 + $0x1] sm:$0x1] %vm2030_vm1, %v632_v38  ;;  %1595 = vmatprep.subr.bf16.mxu1 %v1699_v43  ;;  %v1106_v38 = vld [vmem:[#allocation14 + $0x68] sm:$0xff] }
 0x2f2   :  { %1596 = vmatpush3.bf16.msra.mxu1 %v1699_v43  ;;  %v1136_v43 = vld [vmem:[#allocation14 + $0x158] sm:$0xff] }
 0x2f3   :  { %1597 = vmatprep.subr.bf16.mxu1 %v1700_v44 }
 0x2f5   :  { %1566 = vmatmul.mubr.msk.bf16.gmra.mxu1 %vm208_vm0, %v1689_v39  ;;  %v1121_v39 = vld [vmem:[#allocation14 + $0xe0] sm:$0xff] }
 0x2f6   :  { %1598 = vmatpush3.bf16.msra.mxu1 %v1700_v44  ;;  %v1104_v44 = vld [vmem:[#allocation14 + $0x58] sm:$0xff] }
 0x2f7   :  { %1599 = vmatprep.subr.bf16.mxu1 %v1701_v45 }
 0x2fa   :  { %1600 = vmatpush3.bf16.msra.mxu1 %v1701_v45  ;;  %v1119_v45 = vld [vmem:[#allocation14 + $0xd0] sm:$0xff] }
 0x2fb   :  { %1601 = vmatprep.subr.bf16.mxu1 %v1702_v46 }
 0x2fe   :  { %1602 = vmatpush3.bf16.msra.mxu1 %v1702_v46  ;;  %v1135_v46 = vld [vmem:[#allocation14 + $0x150] sm:$0xff] }
 0x2ff   :  { %1603 = vmatprep.subr.bf16.mxu1 %v1703_v59 }
 0x302   :  { %1604 = vmatpush3.bf16.msra.mxu1 %v1703_v59  ;;  %v1099_v59 = vld [vmem:[#allocation14 + $0x30] sm:$0xff] }
 0x303   :  { %1605 = vmatprep.subr.bf16.mxu1 %v1704_v60 }
 0x306   :  { %1606 = vmatpush3.bf16.msra.mxu1 %v1704_v60  ;;  %v1114_v60 = vld [vmem:[#allocation14 + $0xa8] sm:$0xff] }
 0x307   :  { %1607 = vmatprep.subr.bf16.mxu1 %v1705_v61 }
 0x30a   :  { %1608 = vmatpush3.bf16.msra.mxu1 %v1705_v61  ;;  %v1130_v61 = vld [vmem:[#allocation14 + $0x128] sm:$0xff] }
 0x30b   :  { %1617 = vmatprep.subr.mxu1 %v1887_v29 }
 0x3ad   :  { %v1563_v47 = vpop.f32.mrf.mxu1 }
 0x3af   :  { %v713_v48 = vpop.f32.mrf.mxu1 }
 0x3b1   :  { %v1564_v49 = vpop.f32.mrf.mxu1 }
 0x3b2   :  { %v745_v52 = vpack.c.bf16 %v1564_v49, %v1563_v47  ;;  %v1103_v47 = vld [vmem:[#allocation14 + $0x50] sm:$0xff]  ;;  %v1134_v49 = vld [vmem:[#allocation14 + $0x148] sm:$0xff] }
 0x3b3   :  { %v716_v50 = vpop.f32.mrf.mxu1 }
 0x3b4   :  { %v744_v51 = vpack.c.bf16 %v716_v50, %v713_v48  ;;  %v1118_v48 = vld [vmem:[#allocation14 + $0xc8] sm:$0xff] }
 0x3b5   :  { %v1567_v53 = vpop.f32.mrf.mxu1  ;;  %v1102_v50 = vld [vmem:[#allocation14 + $0x48] sm:$0xff] }
 0x3b6   :  { %1585 = vmatprep.mubr.bf16.mxu0 %v744_v51  ;;  %v1117_v51 = vld [vmem:[#allocation14 + $0xc0] sm:$0xff] }
 0x3b7   :  { %v729_v54 = vpop.f32.mrf.mxu1  ;;  %1586 = vmatmul.mubr.bf16.vlgmr.msra.gmra.mxu0 %v745_v52  ;;  %v1133_v52 = vld [vmem:[#allocation14 + $0x140] sm:$0xff] }
 0x3b8   :  { %1438 = vmatpush3.msra.mxu0 %v1108_v32  ;;  %v1372_v32 = vld [vmem:[%s2101_s13] ss:$0 sm:$0xff] }
 0x3b9   :  { %v1568_v55 = vpop.f32.mrf.mxu1  ;;  %1439 = vmatprep.subr.mxu0 %v1123_v33 }
 0x3ba   :  { %v747_v58 = vpack.c.bf16 %v1568_v55, %v1567_v53  ;;  %1440 = vmatpush3.msra.mxu0 %v1107_v35  ;;  %v1101_v53 = vld [vmem:[#allocation14 + $0x40] sm:$0xff]  ;;  %v1132_v55 = vld [vmem:[#allocation14 + $0x138] sm:$0xff] }
 0x3bb   :  { %v732_v56 = vpop.f32.mrf.mxu1  ;;  %1441 = vmatprep.subr.mxu0 %v1122_v36 }
 0x3bc   :  { %v746_v57 = vpack.c.bf16 %v732_v56, %v729_v54  ;;  %1442 = vmatpush3.msra.mxu0 %v1106_v38  ;;  %v1116_v54 = vld [vmem:[#allocation14 + $0xb8] sm:$0xff] }
 0x3bd   :  { %1443 = vmatprep.subr.mxu0 %v1121_v39  ;;  %v1100_v56 = vld [vmem:[#allocation14 + $0x38] sm:$0xff] }
 0x3be   :  { %1589 = vmatprep.mubr.bf16.mxu0 %v746_v57  ;;  %1444 = vmatpush3.msra.mxu0 %v1105_v41  ;;  %v1115_v57 = vld [vmem:[#allocation14 + $0xb0] sm:$0xff] }
 0x3bf   :  { %1590 = vmatmul.mubr.bf16.gmra.mxu0 %v747_v58  ;;  %1445 = vmatprep.subr.mxu0 %v1120_v42  ;;  %v1131_v58 = vld [vmem:[#allocation14 + $0x130] sm:$0xff] }
 0x3c0   :  { %1446 = vmatpush3.msra.mxu0 %v1104_v44 }
 0x3c1   :  { %1447 = vmatprep.subr.mxu0 %v1119_v45 }
 0x3c2   :  { %1448 = vmatpush3.msra.mxu0 %v1103_v47 }
 0x3c3   :  { %1449 = vmatprep.subr.mxu0 %v1118_v48 }
 0x3c4   :  { %1450 = vmatpush3.msra.mxu0 %v1102_v50 }
 0x3c5   :  { %1451 = vmatprep.subr.mxu0 %v1117_v51 }
 0x3c6   :  { %1452 = vmatpush3.msra.mxu0 %v1101_v53 }
 0x3c7   :  { %1453 = vmatprep.subr.mxu0 %v1116_v54 }
 0x3c8   :  { %1454 = vmatpush3.msra.mxu0 %v1100_v56 }
 0x3c9   :  { %1455 = vmatprep.subr.mxu0 %v1115_v57 }
 0x3ca   :  { %1456 = vmatpush3.msra.mxu0 %v1099_v59 }
 0x3cb   :  { %1457 = vmatprep.subr.mxu0 %v1114_v60 }
 0x477   :  { %v1587_v62 = vpop.f32.mrf.mxu0 }
 0x478   :  { %v862_v4 = vadd.f32 %v1587_v62, %v1353_v0  ;;  %v1098_v62 = vld [vmem:[#allocation14 + $0x28] sm:$0xff] }
 0x479   :  { %v853_v63 = vpop.f32.mrf.mxu0  ;;  %1458 = vmatpush3.msra.mxu0 %v1098_v62 }
 0x47a   :  { %v854_v2 = vadd.f32 %v1353_v0, %v853_v63  ;;  %v886_v11 = vmax.f32 %v862_v4, 0.0  ;;  %v1113_v63 = vld [vmem:[#allocation14 + $0xa0] sm:$0xff]  ;;  %v1096_v4 = vld [vmem:[#allocation14 + $0x18] sm:$0xff] }
 0x47b   :  { %v1588_v1 = vpop.f32.mrf.mxu0  ;;  %1459 = vmatprep.subr.mxu0 %v1113_v63 }
 0x47c   :  { %v865_v3 = vadd.f32 %v1588_v1, %v1353_v0  ;;  %v884_v9 = vmax.f32 %v854_v2, 0.0  ;;  %v1097_v1 = vld [vmem:[#allocation14 + $0x20] sm:$0xff]  ;;  %v1112_v2 = vld [vmem:[#allocation14 + $0x98] sm:$0xff] }
 0x47d   :  { %v856_v5 = vpop.f32.mrf.mxu0  ;;  %1460 = vmatpush3.msra.mxu0 %v1097_v1 }
 0x47e   :  { %v857_v6 = vadd.f32 %v1353_v0, %v856_v5  ;;  %v887_v7 = vmax.f32 %v865_v3, 0.0  ;;  %v1128_v3 = vld [vmem:[#allocation14 + $0x118] sm:$0xff]  ;;  %v1111_v5 = vld [vmem:[#allocation14 + $0x90] sm:$0xff]  ;;  %1461 = vmatprep.subr.mxu0 %v1112_v2 }
 0x47f   :  { %v1591_v8 = vpop.f32.mrf.mxu0  ;;  %1462 = vmatpush3.msra.mxu0 %v1096_v4 }
 0x480   :  { %v885_v10 = vmax.f32 %v857_v6, 0.0  ;;  %v893_v14 = vpack.c.bf16 %v887_v7, %v886_v11  ;;  %v878_v18 = vadd.f32 %v1591_v8, %v1353_v0  ;;  %v1127_v6 = vld [vmem:[#allocation14 + $0x110] sm:$0xff]  ;;  %v1110_v8 = vld [vmem:[#allocation14 + $0x88] sm:$0xff]  ;;  %1463 = vmatprep.subr.mxu0 %v1111_v5  ;;  %v1109_v11 = vld [vmem:[#allocation14 + $0x80] sm:$0xff] }
 0x481   :  { %v869_v12 = vpop.f32.mrf.mxu0  ;;  %v1095_v7 = vld [vmem:[#allocation14 + $0x10] sm:$0xff] }
 0x482   :  { %v892_v13 = vpack.c.bf16 %v885_v10, %v884_v9  ;;  %v870_v16 = vadd.f32 %v1353_v0, %v869_v12  ;;  %v890_v27 = vmax.f32 %v878_v18, 0.0  ;;  %v1126_v9 = vld [vmem:[#allocation14 + $0x108] sm:$0xff]  ;;  %1464 = vmatpush3.msra.mxu0 %v1095_v7  ;;  %v1125_v12 = vld [vmem:[#allocation14 + $0x100] sm:$0xff] }
 0x483   :  { %v1592_v15 = vpop.f32.mrf.mxu0  ;;  %v1094_v10 = vld [vmem:[#allocation14 + $0x8] sm:$0xff]  ;;  %1465 = vmatprep.subr.mxu0 %v1110_v8 }
 0x484   :  { %v881_v17 = vadd.f32 %v1592_v15, %v1353_v0  ;;  %1609 = vmatprep.mubr.bf16.mxu1 %v892_v13  ;;  %v888_v23 = vmax.f32 %v870_v16, 0.0  ;;  %v1093_v13 = vld [vmem:[#allocation14] sm:$0xff]  ;;  %1466 = vmatpush3.msra.mxu0 %v1094_v10 }
 0x485   :  { %v872_v19 = vpop.f32.mrf.mxu0  ;;  %1610 = vmatmul.mubr.bf16.vlgmr.msra.gmra.mxu1 %v893_v14  ;;  %1467 = vmatprep.subr.mxu0 %v1109_v11  ;;  %v1362_v14 = vld [vmem:[%s2099_s11] ss:$0 sm:$0xff] }
 0x486   :  { %v873_v20 = vadd.f32 %v1353_v0, %v872_v19  ;;  %v891_v21 = vmax.f32 %v881_v17, 0.0  ;;  %1618 = vmatpush3.msra.mxu1 %v1140_v31  ;;  %v1129_v0 = vld [vmem:[#allocation14 + $0x120] sm:$0xff]  ;;  %1468 = vmatpush3.msra.mxu0 %v1093_v13 }
 0x487   :  { %1619 = vmatprep.subr.mxu1 %v1887_v29 }
 0x488   :  { %v889_v26 = vmax.f32 %v873_v20, 0.0  ;;  %v895_v28 = vpack.c.bf16 %v891_v21, %v890_v27  ;;  %1620 = vmatpush3.msra.mxu1 %v1139_v34  ;;  %v1371_v21 = vld [vmem:[%s2100_s12] ss:$0 sm:$0xff] }
 0x489   :  { %1621 = vmatprep.subr.mxu1 %v1887_v29 }
 0x48a   :  { %v894_v22 = vpack.c.bf16 %v889_v26, %v888_v23  ;;  %1622 = vmatpush3.msra.mxu1 %v1138_v37 }
 0x48b   :  { %1623 = vmatprep.subr.mxu1 %v1887_v29 }
 0x48c   :  { %1613 = vmatprep.mubr.bf16.mxu1 %v894_v22  ;;  %1624 = vmatpush3.msra.mxu1 %v1137_v40 }
 0x48d   :  { %1614 = vmatmul.mubr.bf16.gmra.mxu1 %v895_v28  ;;  %1625 = vmatprep.subr.mxu1 %v1887_v29 }
 0x48e   :  { %1626 = vmatpush3.msra.mxu1 %v1136_v43  ;;  %1649 = vmatprep.mubr.msk.f32.mxu1 %vm1888_vm2, %v1887_v29 }
 0x48f   :  { %1627 = vmatprep.subr.mxu1 %v1887_v29 }
 0x490   :  { %1628 = vmatpush3.msra.mxu1 %v1135_v46 }
 0x491   :  { %1629 = vmatprep.subr.mxu1 %v1887_v29 }
 0x492   :  { %1630 = vmatpush3.msra.mxu1 %v1134_v49 }
 0x493   :  { %1631 = vmatprep.subr.mxu1 %v1887_v29 }
 0x494   :  { %1632 = vmatpush3.msra.mxu1 %v1133_v52 }
 0x495   :  { %1633 = vmatprep.subr.mxu1 %v1887_v29 }
 0x496   :  { %1634 = vmatpush3.msra.mxu1 %v1132_v55 }
 0x497   :  { %1635 = vmatprep.subr.mxu1 %v1887_v29 }
 0x498   :  { %1636 = vmatpush3.msra.mxu1 %v1131_v58 }
 0x499   :  { %1637 = vmatprep.subr.mxu1 %v1887_v29 }
 0x49a   :  { %1638 = vmatpush3.msra.mxu1 %v1130_v61 }
 0x49b   :  { %1639 = vmatprep.subr.mxu1 %v1887_v29 }
 0x49c   :  { %1640 = vmatpush3.msra.mxu1 %v1129_v0 }
 0x49d   :  { %1641 = vmatprep.subr.mxu1 %v1887_v29 }
 0x49e   :  { %1642 = vmatpush3.msra.mxu1 %v1128_v3 }
 0x49f   :  { %1643 = vmatprep.subr.mxu1 %v1887_v29 }
 0x4a0   :  { %1644 = vmatpush3.msra.mxu1 %v1127_v6 }
 0x4a1   :  { %1645 = vmatprep.subr.mxu1 %v1887_v29 }
 0x4a2   :  { %1646 = vmatpush3.msra.mxu1 %v1126_v9 }
 0x4a3   :  { %1647 = vmatprep.subr.mxu1 %v1887_v29 }
 0x4a4   :  { %1648 = vmatpush3.msra.mxu1 %v1125_v12 }
 0x545   :  { %v1611_v15 = vpop.f32.mrf.mxu1 }
 0x546   :  { %v1010_v16 = vadd.f32 %v1611_v15, %v1362_v14 }
 0x547   :  { %v1001_v17 = vpop.f32.mrf.mxu1 }
 0x548   :  { %v1002_v18 = vadd.f32 %v1362_v14, %v1001_v17  ;;  %v1034_v19 = vmax.f32 %v1010_v16, 0.0  ;;  %v1144_v16 = vshrl.u32 %v171_v24, 7 }
 0x549   :  { %v1612_v20 = vpop.f32.mrf.mxu1 }
 0x54a   :  { %v1032_v23 = vmax.f32 %v1002_v18, 0.0  ;;  %v1013_v26 = vadd.f32 %v1612_v20, %v1362_v14  ;;  %v1049_v30 = vmul.f32 %v1371_v21, %v1034_v19  ;;  %v1145_v17 = vsub.s32 0, %v1144_v16 }
 0x54b   :  { %v1004_v27 = vpop.f32.mrf.mxu1  ;;  %v1149_v18 = vsub.s32 1, %v1144_v16  ;;  %v1153_v19 = vsub.s32 2, %v1144_v16 }
 0x54c   :  { %v1047_v22 = vmul.f32 %v1371_v21, %v1032_v23  ;;  %v1035_v28 = vmax.f32 %v1013_v26, 0.0  ;;  %v1005_v29 = vadd.f32 %v1362_v14, %v1004_v27  ;;  %v1064_v40 = vadd.f32 %v1372_v32, %v1049_v30 }
 0x54d   :  { %v1615_v31 = vpop.f32.mrf.mxu1 }
 0x54e   :  { %v1033_v33 = vmax.f32 %v1005_v29, 0.0  ;;  %v1062_v34 = vadd.f32 %v1372_v32, %v1047_v22  ;;  %v1050_v35 = vmul.f32 %v1371_v21, %v1035_v28  ;;  %v1026_v36 = vadd.f32 %v1615_v31, %v1362_v14 }
 0x54f   :  { %v1017_v37 = vpop.f32.mrf.mxu1  ;;  %v1072_v53 = vmax.f32 %v1064_v40, 0.0 }
 0x550   :  { %v1048_v38 = vmul.f32 %v1371_v21, %v1033_v33  ;;  %v1018_v39 = vadd.f32 %v1362_v14, %v1017_v37  ;;  %v1038_v43 = vmax.f32 %v1026_v36, 0.0  ;;  %v1070_v46 = vmax.f32 %v1062_v34, 0.0 }
 0x551   :  { %v1616_v41 = vpop.f32.mrf.mxu1  ;;  %v1065_v47 = vadd.f32 %v1372_v32, %v1050_v35 }
 0x552   :  { %v1063_v42 = vadd.f32 %v1372_v32, %v1048_v38  ;;  %v1036_v44 = vmax.f32 %v1018_v39, 0.0  ;;  %v1029_v45 = vadd.f32 %v1616_v41, %v1362_v14  ;;  %v1053_v55 = vmul.f32 %v1371_v21, %v1038_v43 }
 0x553   :  { %v1020_v48 = vpop.f32.mrf.mxu1  ;;  %v1073_v58 = vmax.f32 %v1065_v47, 0.0 }
 0x554   :  { %v1071_v49 = vmax.f32 %v1063_v42, 0.0  ;;  %v1051_v50 = vmul.f32 %v1371_v21, %v1036_v44  ;;  %v1039_v51 = vmax.f32 %v1029_v45, 0.0  ;;  %v1021_v52 = vadd.f32 %v1362_v14, %v1020_v48 }
 0x555   :  { %v1068_v62 = vadd.f32 %v1372_v32, %v1053_v55 }
 0x556   :  { %v1078_v54 = vadd.f32 %v1071_v49, %v1070_v46  ;;  %v1066_v56 = vadd.f32 %v1372_v32, %v1051_v50  ;;  %v1037_v57 = vmax.f32 %v1021_v52, 0.0  ;;  %v1054_v60 = vmul.f32 %v1371_v21, %v1039_v51 }
 0x557   :  { %v1076_v5 = vmax.f32 %v1068_v62, 0.0 }
 0x558   :  { %v1079_v59 = vadd.f32 %v1078_v54, %v1072_v53  ;;  %v1052_v61 = vmul.f32 %v1371_v21, %v1037_v57  ;;  %v1074_v63 = vmax.f32 %v1066_v56, 0.0  ;;  %v1069_v3 = vadd.f32 %v1372_v32, %v1054_v60 }
 0x55a   :  { %v1080_v0 = vadd.f32 %v1079_v59, %v1073_v58  ;;  %v1067_v1 = vadd.f32 %v1372_v32, %v1052_v61  ;;  %v1077_v7 = vmax.f32 %v1069_v3, 0.0 }
 0x55c   :  { %v1081_v2 = vadd.f32 %v1080_v0, %v1074_v63  ;;  %v1075_v4 = vmax.f32 %v1067_v1, 0.0 }
 0x55e   :  { %v1082_v6 = vadd.f32 %v1081_v2, %v1075_v4 }
 0x560   :  { %v1083_v8 = vadd.f32 %v1082_v6, %v1076_v5 }
 0x562   :  { %v1084_v9 = vadd.f32 %v1083_v8, %v1077_v7 }
 0x564   :  { %v1085_v10 = vrot.slane %v1084_v9, 4 }
 0x566   :  { %v1086_v11 = vadd.f32 %v1085_v10, %v1084_v9 }
 0x568   :  { %v1087_v12 = vrot.slane %v1086_v11, 2 }
 0x56a   :  { %v1088_v13 = vadd.f32 %v1087_v12, %v1086_v11 }
 0x56c   :  { %v1089_v14 = vrot.slane %v1088_v13, 1 }
 0x56e   :  { %v1090_v15 = vadd.f32 %v1089_v14, %v1088_v13 }
 0x570   :  { %1091 = vst.msk [vmem:[#allocation2 + $0x2] sm:$0x1] %vm2030_vm1, %v1090_v15 }
 0x577   :  { %v1092_v20 = vld [vmem:[#allocation2] sm:$0x7] }
 0x578   :  { %v1146_v21 = vrot.slane %v1092_v20, %v1145_v17  ;;  %v1150_v23 = vrot.slane %v1092_v20, %v1149_v18  ;;  %v1154_v26 = vrot.slane %v1092_v20, %v1153_v19 }
 0x57a   :  { %1222 = vmatprep.mubr.f32.mxu0 %v1150_v23  ;;  %1650 = vmatmul.mubr.f32.vlgmr.msra.gmra.mxu1 %v1154_v26 }
 0x57b   :  { %1223 = vmatmul.mubr.f32.vlgmr.msra.gmra.mxu0 %v1146_v21 }
 0x63a   :  { %v1294_v27 = vpop.f32.mrf.mxu1 }
 0x63b   :  { %v1469_v22 = vpop.f32.mrf.mxu0 }
 0x63c   :  { %v1651_v28 = vpop.f32.mrf.mxu1 }
 0x63d   :  { %v1470_v29 = vpop.f32.mrf.mxu0 }
 0x63e   :  { %v1471_v30 = vadd.f32 %v1470_v29, %v1469_v22 }
 0x640   :  { %v1225_v24 = vadd.f32 %v1471_v30, %v1141_v25 }
 0x642   :  { %v1295_v31 = vadd.f32 %v1294_v27, %v1225_v24 }
 0x644   :  { %1298 = vst [vmem:[#allocation15] sm:$0x1] %v1295_v31 }
 0x645   :  { %1857 = shalt.err (!%p1854_p11)
}
 0x646   :  { %1308 = dma.vmem_to_hbm [thread:$0]  %s1306_s1, 16, %s2104_s16, [#allocation5]  }
 0x647   :  { %1874 = dma.done.wait [#allocation5], 16  }
 0x648   :  { %1875 = vsyncadd [#allocation5], 4294967280 }
 0x649   :  { %1312 = vsyncpa [#allocation4], 1 }
 0x64a   :  { %1313 = vsyncpa [#allocation7], 1 }
 0x64b   :  { %1314 = vsyncpa [#allocation10], 1 }
 0x64c   :  { %1315 = vsyncpa [#allocation13], 1 }
 0x64d   :  { %1316 = vsyncpa [#allocation5], 1 }

</bundles_post_ra>
